<compile_context>
chip_gen: v6e
topology: v6e:2x2x1
jax: 0.10.0
libtpu: 0.0.40
codegen_flags: <defaults>
</compile_context>

<pallas_src>
import functools

import jax
import jax.numpy as jnp
from jax.experimental import pallas as pl
from jax.experimental.pallas import tpu as pltpu


def _round_up(n, m):
    return (n + m - 1) // m * m


def _mlp_kernel(x_ref, w1_ref, b1_ref, w2_ref, b2_ref, w3_ref, b3_ref, o_ref):
    # fc1 -> ReLU (dropout = identity in eval mode). bf16 operands into the MXU,
    # f32 accumulation + f32 elementwise epilogue.
    x = x_ref[...].astype(jnp.bfloat16)                              # [TB, in_f]
    h1 = jnp.dot(x, w1_ref[...], preferred_element_type=jnp.float32)
    h1 = jnp.maximum(h1 + b1_ref[...], 0.0)                          # f32 [TB, 128]
    # fc2 -> ReLU
    h2 = jnp.dot(h1.astype(jnp.bfloat16), w2_ref[...],
                 preferred_element_type=jnp.float32)
    h2 = jnp.maximum(h2 + b2_ref[...], 0.0)                          # f32 [TB, 64]
    # fc3 (logits, no activation)
    o = jnp.dot(h2.astype(jnp.bfloat16), w3_ref[...],
                preferred_element_type=jnp.float32)
    o_ref[...] = (o + b3_ref[...]).astype(o_ref.dtype)               # f32 [TB, out_f]


def prepare_params(params):
    """One-time (outside the hot path) weight prep: bf16 weights, f32 biases."""
    return {
        "w1": params["w1"].astype(jnp.bfloat16),
        "w2": params["w2"].astype(jnp.bfloat16),
        "w3": params["w3"].astype(jnp.bfloat16),
        "b1": params["b1"].astype(jnp.float32),
        "b2": params["b2"].astype(jnp.float32),
        "b3": params["b3"].astype(jnp.float32),
    }


@functools.partial(jax.jit, static_argnames=("tile_b",))
def chatbot_forward(x, params, *, tile_b=2048):
    """x: [B, input_size] float32. params: output of prepare_params (bf16 W, f32 b)."""
    w1, b1 = params["w1"], params["b1"]
    w2, b2 = params["w2"], params["b2"]
    w3, b3 = params["w3"], params["b3"]

    B, in_f = x.shape
    h1_f, h2_f, out_f = w1.shape[1], w2.shape[1], w3.shape[1]

    # ---- batch tiling: tile must be a multiple of 16 (bf16 sublane packing).
    # Cap at ~half the padded batch when possible so the grid has >= 2 steps and
    # the "parallel" batch axis can shard across both TensorCores on v7x.
    b16 = _round_up(B, 16)
    tb = max(16, min(tile_b, b16))
    if b16 >= 32:
        tb = min(tb, _round_up((b16 + 1) // 2, 16))
    tb = _round_up(tb, 16)
    b_pad = _round_up(B, tb)

    xp = x if b_pad == B else jnp.pad(x, ((0, b_pad - B), (0, 0)))

    grid = (b_pad // tb,)
    resident = lambda shape: pl.BlockSpec(shape, lambda i: (0, 0))  # stays in VMEM

    flops = 2 * b_pad * (in_f * h1_f + h1_f * h2_f + h2_f * out_f)
    bytes_accessed = (xp.size * 4
                      + (w1.size + w2.size + w3.size) * 2
                      + (b1.size + b2.size + b3.size) * 4
                      + b_pad * out_f * 4)

    out = pl.pallas_call(
        _mlp_kernel,
        out_shape=jax.ShapeDtypeStruct((b_pad, out_f), jnp.float32),
        grid=grid,
        in_specs=[
            pl.BlockSpec((tb, in_f), lambda i: (i, 0)),   # x: tiled over batch
            resident((in_f, h1_f)), resident((1, h1_f)),  # w1, b1
            resident((h1_f, h2_f)), resident((1, h2_f)),  # w2, b2
            resident((h2_f, out_f)), resident((1, out_f)),  # w3, b3
        ],
        out_specs=pl.BlockSpec((tb, out_f), lambda i: (i, 0)),
        compiler_params=pltpu.CompilerParams(dimension_semantics=("parallel",)),
        cost_estimate=pl.CostEstimate(flops=flops, transcendentals=0,
                                      bytes_accessed=bytes_accessed),
    )(xp, w1, b1, w2, b2, w3, b3)

    return out[:B, :]


def init_params(key, input_size, output_size):
    """Deterministic init matching nn.Linear shapes (stored as [in, out])."""
    k1, k2, k3, k4, k5, k6 = jax.random.split(key, 6)

    def linear(kw, kb, fan_in, fan_out):
        bound = 1.0 / jnp.sqrt(fan_in)
        w = jax.random.uniform(kw, (fan_in, fan_out), jnp.float32, -bound, bound)
        b = jax.random.uniform(kb, (1, fan_out), jnp.float32, -bound, bound)
        return w, b

    w1, b1 = linear(k1, k2, input_size, 128)
    w2, b2 = linear(k3, k4, 128, 64)
    w3, b3 = linear(k5, k6, 64, output_size)
    return {"w1": w1, "b1": b1, "w2": w2, "b2": b2, "w3": w3, "b3": b3}


if __name__ == "__main__":
    key = jax.random.PRNGKey(0)
    kx, kp = jax.random.split(key)

    batch = 8
    input_size = 32      # e.g. bag-of-words vocabulary size
    output_size = 16     # e.g. number of intent classes

    x = jax.random.normal(kx, (batch, input_size), dtype=jnp.float32)
    params = init_params(kp, input_size, output_size)
    prepped = prepare_params(params)   # one-time weight prep, off the hot path

    out = chatbot_forward(x, prepped)
    out = jax.block_until_ready(out)

    # reference check in plain JAX (f32); kernel uses bf16 matmul operands,
    # so allow a loose tolerance.
    ref = jnp.maximum(x @ params["w1"] + params["b1"], 0.0)
    ref = jnp.maximum(ref @ params["w2"] + params["b2"], 0.0)
    ref = ref @ params["w3"] + params["b3"]
    assert out.shape == (batch, output_size)
    assert jnp.allclose(out, ref, atol=5e-2, rtol=5e-2), float(jnp.max(jnp.abs(out - ref)))

    print("KERNEL_OK")
</pallas_src>

<mosaic_0001>
module attributes {stable_mosaic.version = 11 : i64} {
  func.func @_mlp_kernel(%arg0: i32, %arg1: memref<16x32xf32, #tpu.memory_space<vmem>>, %arg2: memref<32x128xbf16, #tpu.memory_space<vmem>>, %arg3: memref<1x128xf32, #tpu.memory_space<vmem>>, %arg4: memref<128x64xbf16, #tpu.memory_space<vmem>>, %arg5: memref<1x64xf32, #tpu.memory_space<vmem>>, %arg6: memref<64x16xbf16, #tpu.memory_space<vmem>>, %arg7: memref<1x16xf32, #tpu.memory_space<vmem>>, %arg8: memref<16x16xf32, #tpu.memory_space<vmem>>) attributes {dimension_semantics = [#tpu.dimension_semantics<parallel>], iteration_bounds = array<i64: 1>, scalar_prefetch = 0 : i64, scratch_operands = 0 : i64, tpu.core_type = #tpu.core_type<tc>, window_params = [{transform_indices = @transform_0, window_bounds = array<i64: 16, 32>}, {pipeline_mode = #tpu.pipeline_mode<synchronous>, transform_indices = @transform_1, window_bounds = array<i64: 32, 128>}, {pipeline_mode = #tpu.pipeline_mode<synchronous>, transform_indices = @transform_2, window_bounds = array<i64: 1, 128>}, {pipeline_mode = #tpu.pipeline_mode<synchronous>, transform_indices = @transform_3, window_bounds = array<i64: 128, 64>}, {pipeline_mode = #tpu.pipeline_mode<synchronous>, transform_indices = @transform_4, window_bounds = array<i64: 1, 64>}, {pipeline_mode = #tpu.pipeline_mode<synchronous>, transform_indices = @transform_5, window_bounds = array<i64: 64, 16>}, {pipeline_mode = #tpu.pipeline_mode<synchronous>, transform_indices = @transform_6, window_bounds = array<i64: 1, 16>}, {transform_indices = @transform_7, window_bounds = array<i64: 16, 16>}]} {
    %c0 = arith.constant 0 : index
    %c0_0 = arith.constant 0 : index
    %0 = vector.load %arg1[%c0, %c0_0] : memref<16x32xf32, #tpu.memory_space<vmem>>, vector<16x32xf32>
    %1 = arith.truncf %0 : vector<16x32xf32> to vector<16x32xbf16>
    %c0_1 = arith.constant 0 : index
    %c0_2 = arith.constant 0 : index
    %2 = vector.load %arg2[%c0_1, %c0_2] : memref<32x128xbf16, #tpu.memory_space<vmem>>, vector<32x128xbf16>
    %cst = arith.constant dense<0.000000e+00> : vector<16x128xf32>
    %3 = tpu.matmul %1, %2, %cst {dimension_numbers = #tpu.dot_dimension_numbers<[1], [0], [0], [1], [0, 0, 1, 1], [], []>} : vector<16x32xbf16>, vector<32x128xbf16>, vector<16x128xf32> -> vector<16x128xf32>
    %c0_3 = arith.constant 0 : index
    %c0_4 = arith.constant 0 : index
    %4 = vector.load %arg3[%c0_3, %c0_4] : memref<1x128xf32, #tpu.memory_space<vmem>>, vector<1x128xf32>
    %5 = vector.broadcast %4 : vector<1x128xf32> to vector<16x128xf32>
    %6 = arith.addf %3, %5 : vector<16x128xf32>
    %cst_5 = arith.constant 0.000000e+00 : f32
    %7 = vector.broadcast %cst_5 : f32 to vector<16x128xf32>
    %8 = arith.maximumf %6, %7 : vector<16x128xf32>
    %9 = arith.truncf %8 : vector<16x128xf32> to vector<16x128xbf16>
    %c0_6 = arith.constant 0 : index
    %c0_7 = arith.constant 0 : index
    %10 = vector.load %arg4[%c0_6, %c0_7] : memref<128x64xbf16, #tpu.memory_space<vmem>>, vector<128x64xbf16>
    %cst_8 = arith.constant dense<0.000000e+00> : vector<16x64xf32>
    %11 = tpu.matmul %9, %10, %cst_8 {dimension_numbers = #tpu.dot_dimension_numbers<[1], [0], [0], [1], [0, 0, 1, 1], [], []>} : vector<16x128xbf16>, vector<128x64xbf16>, vector<16x64xf32> -> vector<16x64xf32>
    %c0_9 = arith.constant 0 : index
    %c0_10 = arith.constant 0 : index
    %12 = vector.load %arg5[%c0_9, %c0_10] : memref<1x64xf32, #tpu.memory_space<vmem>>, vector<1x64xf32>
    %13 = vector.broadcast %12 : vector<1x64xf32> to vector<16x64xf32>
    %14 = arith.addf %11, %13 : vector<16x64xf32>
    %cst_11 = arith.constant 0.000000e+00 : f32
    %15 = vector.broadcast %cst_11 : f32 to vector<16x64xf32>
    %16 = arith.maximumf %14, %15 : vector<16x64xf32>
    %17 = arith.truncf %16 : vector<16x64xf32> to vector<16x64xbf16>
    %c0_12 = arith.constant 0 : index
    %c0_13 = arith.constant 0 : index
    %18 = vector.load %arg6[%c0_12, %c0_13] : memref<64x16xbf16, #tpu.memory_space<vmem>>, vector<64x16xbf16>
    %cst_14 = arith.constant dense<0.000000e+00> : vector<16x16xf32>
    %19 = tpu.matmul %17, %18, %cst_14 {dimension_numbers = #tpu.dot_dimension_numbers<[1], [0], [0], [1], [0, 0, 1, 1], [], []>} : vector<16x64xbf16>, vector<64x16xbf16>, vector<16x16xf32> -> vector<16x16xf32>
    %c0_15 = arith.constant 0 : index
    %c0_16 = arith.constant 0 : index
    %20 = vector.load %arg7[%c0_15, %c0_16] : memref<1x16xf32, #tpu.memory_space<vmem>>, vector<1x16xf32>
    %21 = vector.broadcast %20 : vector<1x16xf32> to vector<16x16xf32>
    %22 = arith.addf %19, %21 : vector<16x16xf32>
    %c0_17 = arith.constant 0 : index
    %c0_18 = arith.constant 0 : index
    %23 = vector.load %arg8[%c0_17, %c0_18] : memref<16x16xf32, #tpu.memory_space<vmem>>, vector<16x16xf32>
    tpu.vector_store %arg8[%c0_17, %c0_18], %22 {strides = array<i32>} : memref<16x16xf32, #tpu.memory_space<vmem>>, vector<16x16xf32>,
    return
  }
  func.func @transform_0(%arg0: i32) -> (i32, i32) {
    %c0_i32 = arith.constant 0 : i32
    %c0_i32_0 = arith.constant 0 : i32
    return %arg0, %c0_i32 : i32, i32
  }
  func.func @transform_1(%arg0: i32) -> (i32, i32) {
    %c0_i32 = arith.constant 0 : i32
    %c0_i32_0 = arith.constant 0 : i32
    %c0_i32_1 = arith.constant 0 : i32
    return %c0_i32, %c0_i32_0 : i32, i32
  }
  func.func @transform_2(%arg0: i32) -> (i32, i32) {
    %c0_i32 = arith.constant 0 : i32
    %c0_i32_0 = arith.constant 0 : i32
    %c0_i32_1 = arith.constant 0 : i32
    return %c0_i32, %c0_i32_0 : i32, i32
  }
  func.func @transform_3(%arg0: i32) -> (i32, i32) {
    %c0_i32 = arith.constant 0 : i32
    %c0_i32_0 = arith.constant 0 : i32
    %c0_i32_1 = arith.constant 0 : i32
    return %c0_i32, %c0_i32_0 : i32, i32
  }
  func.func @transform_4(%arg0: i32) -> (i32, i32) {
    %c0_i32 = arith.constant 0 : i32
    %c0_i32_0 = arith.constant 0 : i32
    %c0_i32_1 = arith.constant 0 : i32
    return %c0_i32, %c0_i32_0 : i32, i32
  }
  func.func @transform_5(%arg0: i32) -> (i32, i32) {
    %c0_i32 = arith.constant 0 : i32
    %c0_i32_0 = arith.constant 0 : i32
    %c0_i32_1 = arith.constant 0 : i32
    return %c0_i32, %c0_i32_0 : i32, i32
  }
  func.func @transform_6(%arg0: i32) -> (i32, i32) {
    %c0_i32 = arith.constant 0 : i32
    %c0_i32_0 = arith.constant 0 : i32
    %c0_i32_1 = arith.constant 0 : i32
    return %c0_i32, %c0_i32_0 : i32, i32
  }
  func.func @transform_7(%arg0: i32) -> (i32, i32) {
    %c0_i32 = arith.constant 0 : i32
    %c0_i32_0 = arith.constant 0 : i32
    return %arg0, %c0_i32 : i32, i32
  }
}

</mosaic_0001>

<bundles_post_ra>
// kernel: chatbot_forward.1
= control target key start
LH: loop header
LB: loop body
LE: loop exit
PB: predicated region body
PF: predicated region fallthrough
CT: control target
= control target key end

     0   :  { %v399_v0 = vmov 0.0   ;;  %vm400_vm0 = vmmov 0   ;;  %vm53_vm1 = vcmask 261120   ;;  %vm255_vm2 = vcmask 523264   ;;  %s507_s1 = inlined_call_operand.vmem [shape: bf16[32,128], index: 1, kind: input, shape index: {}]   ;;  %s508_s0 = inlined_call_operand.vmem [shape: f32[16,32], index: 0, kind: input, shape index: {}]   ;;  %s509_s3 = inlined_call_operand.vmem [shape: bf16[128,64], index: 3, kind: input, shape index: {}]   ;;  %s510_s5 = inlined_call_operand.vmem [shape: bf16[64,16], index: 5, kind: input, shape index: {}]   ;;  %s511_s2 = inlined_call_operand.vmem [shape: f32[1,128], index: 2, kind: input, shape index: {}]   ;;  %s512_s4 = inlined_call_operand.vmem [shape: f32[1,64], index: 4, kind: input, shape index: {}]   ;;  %s513_s6 = inlined_call_operand.vmem [shape: f32[1,16], index: 6, kind: input, shape index: {}]   ;;  %s514_s7 = inlined_call_operand.vmem [shape: f32[16,16], index: 7, kind: output, shape index: {}]  }
   0x1   :  { %343 = vmatprep.subr.bf16.mxu0 %v399_v0  ;;  %v385_v1 = vld [vmem:[%s507_s1 + $0x8] sm:$0xff]   ;;  %347 = vmatprep.mubr.msk.bf16.mxu0 %vm400_vm0, %v399_v0  ;;  %v386_v2 = vld [vmem:[%s507_s1] sm:$0xff]   ;;  %v387_v5 = vld [vmem:[%s509_s3 + $0x38] sm:$0xff]   ;;  %vm300_vm3 = vcmask 130048  }
   0x2   :  { %351 = vmatprep.subr.bf16.mxu1 %v399_v0  ;;  %367 = vmatprep.mubr.msk.bf16.mxu1 %vm400_vm0, %v399_v0  ;;  %v27_v3 = vld [vmem:[%s508_s0] sm:$0xff]  ;;  %v28_v4 = vld [vmem:[%s508_s0 + $0x8] sm:$0xff]  ;;  %v388_v7 = vld [vmem:[%s509_s3 + $0x30] sm:$0xff]  }
   0x3   :  { %344 = vmatpush3.bf16.msra.mxu0 %v385_v1  ;;  %v29_v6 = vpack.c.bf16 %v28_v4, %v27_v3  ;;  %352 = vmatpush3.bf16.msra.mxu1 %v387_v5  ;;  %v389_v8 = vld [vmem:[%s509_s3 + $0x28] sm:$0xff]   ;;  %v390_v9 = vld [vmem:[%s509_s3 + $0x20] sm:$0xff]   ;;  %v391_v10 = vld [vmem:[%s509_s3 + $0x18] sm:$0xff]  }
   0x4   :  { %345 = vmatprep.subr.bf16.mxu0 %v399_v0  ;;  %353 = vmatprep.subr.bf16.mxu1 %v399_v0  ;;  %v392_v11 = vld [vmem:[%s509_s3 + $0x10] sm:$0xff]   ;;  %v393_v12 = vld [vmem:[%s509_s3 + $0x8] sm:$0xff]   ;;  %v394_v13 = vld [vmem:[%s509_s3] sm:$0xff]  }
   0x5   :  { %v395_v14 = vld [vmem:[%s510_s5 + $0x18] sm:$0xff]   ;;  %v307_v15 = vld [vmem:[%s511_s2] ss:$0 sm:$0xff]  ;;  %v396_v25 = vld [vmem:[%s510_s5 + $0x10] sm:$0xff]  }
   0x6   :  { %v397_v26 = vld [vmem:[%s510_s5 + $0x8] sm:$0xff]   ;;  %v398_v27 = vld [vmem:[%s510_s5] sm:$0xff]  }
   0x7   :  { %346 = vmatpush3.bf16.msra.mxu0 %v386_v2  ;;  %354 = vmatpush3.bf16.msra.mxu1 %v388_v7  ;;  %v311_v28 = vld [vmem:[%s512_s4] ss:$0 sm:$0xff] }
   0x8   :  { %371 = vmatprep.subr.bf16.mxu0 %v399_v0  ;;  %355 = vmatprep.subr.bf16.mxu1 %v399_v0  ;;  %v320_v38 = vld [vmem:[%s513_s6] ss:$0 sm:$0xff] }
   0xa   :  { %348 = vmatmul.mubr.msk.bf16.vlgmr.msra.gmra.mxu0 %vm53_vm1, %v29_v6 }
   0xb   :  { %379 = vmatprep.mubr.msk.bf16.mxu0 %vm400_vm0, %v399_v0  ;;  %356 = vmatpush3.bf16.msra.mxu1 %v389_v8 }
   0xc   :  { %357 = vmatprep.subr.bf16.mxu1 %v399_v0  ;;  %372 = vmatpush3.bf16.msra.mxu0 %v395_v14 }
   0xd   :  { %373 = vmatprep.subr.bf16.mxu0 %v399_v0 }
   0xf   :  { %358 = vmatpush3.bf16.msra.mxu1 %v390_v9 }
  0x10   :  { %359 = vmatprep.subr.bf16.mxu1 %v399_v0  ;;  %374 = vmatpush3.bf16.msra.mxu0 %v396_v25 }
  0x11   :  { %375 = vmatprep.subr.bf16.mxu0 %v399_v0 }
  0x13   :  { %360 = vmatpush3.bf16.msra.mxu1 %v391_v10 }
  0x14   :  { %361 = vmatprep.subr.bf16.mxu1 %v399_v0  ;;  %376 = vmatpush3.bf16.msra.mxu0 %v397_v26 }
  0x15   :  { %377 = vmatprep.subr.bf16.mxu0 %v399_v0 }
  0x17   :  { %362 = vmatpush3.bf16.msra.mxu1 %v392_v11 }
  0x18   :  { %363 = vmatprep.subr.bf16.mxu1 %v399_v0  ;;  %378 = vmatpush3.bf16.msra.mxu0 %v398_v27 }
  0x1b   :  { %364 = vmatpush3.bf16.msra.mxu1 %v393_v12 }
  0x1c   :  { %365 = vmatprep.subr.bf16.mxu1 %v399_v0 }
  0x1f   :  { %366 = vmatpush3.bf16.msra.mxu1 %v394_v13 }
  0xca   :  { %v91_v16 = vpop.f32.mrf.mxu0 }
  0xcb   :  { %v92_v18 = vadd.f32 %v307_v15, %v91_v16 }
  0xcc   :  { %v349_v17 = vpop.f32.mrf.mxu0 }
  0xcd   :  { %v98_v22 = vmax.f32 %v92_v18, 0.0 }
  0xce   :  { %v94_v19 = vpop.f32.mrf.mxu0 }
  0xcf   :  { %v95_v20 = vadd.f32 %v307_v15, %v94_v19 }
  0xd0   :  { %v350_v21 = vpop.f32.mrf.mxu0 }
  0xd1   :  { %v99_v23 = vmax.f32 %v95_v20, 0.0 }
  0xd3   :  { %v100_v24 = vpack.c.bf16 %v99_v23, %v98_v22 }
  0xd5   :  { %368 = vmatmul.mubr.bf16.vlgmr.msra.gmra.mxu1 %v100_v24 }
 0x195   :  { %v206_v29 = vpop.f32.mrf.mxu1 }
 0x196   :  { %v207_v31 = vadd.f32 %v311_v28, %v206_v29 }
 0x197   :  { %v369_v30 = vpop.f32.mrf.mxu1 }
 0x198   :  { %v213_v35 = vmax.f32 %v207_v31, 0.0 }
 0x199   :  { %v209_v32 = vpop.f32.mrf.mxu1 }
 0x19a   :  { %v210_v33 = vadd.f32 %v311_v28, %v209_v32 }
 0x19b   :  { %v370_v34 = vpop.f32.mrf.mxu1 }
 0x19c   :  { %v214_v36 = vmax.f32 %v210_v33, 0.0 }
 0x19e   :  { %v215_v37 = vpack.c.bf16 %v214_v36, %v213_v35 }
 0x1a0   :  { %380 = vmatmul.mubr.msk.bf16.vlgmr.msra.gmra.mxu0 %vm255_vm2, %v215_v37 }
 0x260   :  { %v293_v39 = vpop.f32.mrf.mxu0 }
 0x261   :  { %v294_v40 = vadd.f32 %v320_v38, %v293_v39 }
 0x262   :  { %v381_v41 = vpop.f32.mrf.mxu0 }
 0x263   :  { %301 = vst.msk [vmem:[%s514_s7] sm:$0xff] %vm300_vm3, %v294_v40 }
 0x264   :  { %v296_v42 = vpop.f32.mrf.mxu0 }
 0x265   :  { %v297_v43 = vadd.f32 %v320_v38, %v296_v42 }
 0x266   :  { %v382_v44 = vpop.f32.mrf.mxu0 }
 0x267   :  { %302 = vst.msk [vmem:[%s514_s7 + $0x8] sm:$0xff] %vm300_vm3, %v297_v43 }

</bundles_post_ra>
